<compile_context>
chip_gen: v7x
topology: tpu7x:2x2x1
jax: 0.10.0
libtpu: 0.0.40
codegen_flags: <defaults>
</compile_context>

<pallas_src>
import functools

import jax
import jax.numpy as jnp
from jax.experimental import pallas as pl
from jax.experimental.pallas import tpu as pltpu

EPS = 1e-5
NEG_SLOPE = 0.2


def _conv_stats_kernel(x_ref, w00_ref, w01_ref, w10_ref, w11_ref, mask_ref,
                       y_ref, s_ref, ss_ref, *, cinp, wpo, l_out):
    """Per (sample, Cout tile): 3x3 stride-2 conv as 4 shift-grouped MXU matmuls
    plus per-channel BN partial statistics, in one traversal.

    x_ref   : (1, 4*Cinp, L+1) bf16  phase-stacked padded input (one sample),
                                     phase order [(odd,even),(even,even),(even,odd),(odd,odd)]
    w**_ref : (TC, k*Cinp)     bf16  conv weights regrouped by output shift
    mask_ref: (1, L_out)       f32   1.0 on valid output columns, 0.0 elsewhere
    y_ref   : (1, TC, L_out)   bf16  raw conv output (padded spatial layout)
    s_ref   : (1, TC, 1)       f32   per-channel sum over valid positions
    ss_ref  : (1, TC, 1)       f32   per-channel sum of squares
    """
    f32 = jnp.float32
    # Shift group (0,0): taps (di,dj) in {0,1}x{0,1} -> shift 0, all 4 phases at once.
    acc = jnp.dot(w00_ref[...], x_ref[0, :, 0:l_out], preferred_element_type=f32)
    # Shift group (0,1): taps (di in {0,1}, dj=2) -> shift of 1 column.
    acc = acc + jnp.dot(w01_ref[...], x_ref[0, 0:2 * cinp, 1:1 + l_out],
                        preferred_element_type=f32)
    # Shift group (1,0): taps (di=2, dj in {0,1}) -> shift of one phase row (Wpo).
    acc = acc + jnp.dot(w10_ref[...], x_ref[0, cinp:3 * cinp, wpo:wpo + l_out],
                        preferred_element_type=f32)
    # Shift group (1,1): tap (2,2) -> shift of Wpo + 1.
    acc = acc + jnp.dot(w11_ref[...],
                        x_ref[0, cinp:2 * cinp, wpo + 1:wpo + 1 + l_out],
                        preferred_element_type=f32)

    ym = acc * mask_ref[...]                       # zero the junk columns
    y_ref[0] = ym.astype(y_ref.dtype)
    s_ref[0] = jnp.sum(ym, axis=1, keepdims=True)
    ss_ref[0] = jnp.sum(ym * ym, axis=1, keepdims=True)


def _bn_lrelu_kernel(y_ref, scale_ref, shift_ref, o_ref, *, neg_slope):
    """Elementwise y * scale + shift followed by LeakyReLU, per (n, Cout tile)."""
    y = y_ref[0].astype(jnp.float32)               # (TC, L_out)
    z = y * scale_ref[...] + shift_ref[...]        # (TC, 1) broadcasts over lanes
    o_ref[0] = jnp.where(z >= 0, z, neg_slope * z)


def unet_down_bic(x, weight, gamma=None, beta=None):
    """Forward of UNetDown_bic (normalize=True, dropout=0.0), NCHW in / NCHW out.

    x:      (N, Cin, H, W)     float32
    weight: (Cout, Cin, 3, 3)  float32  (PyTorch Conv2d OIHW layout)
    gamma, beta: optional (Cout,) BatchNorm affine params (default 1 / 0).
    returns (N, Cout, H//2, W//2) float32
    """
    N, Cin, H, W = x.shape
    Cout = weight.shape[0]
    assert weight.shape == (Cout, Cin, 3, 3)
    assert H % 2 == 0 and W % 2 == 0
    Ho, Wo = H // 2, W // 2
    Hpo, Wpo = Ho + 1, Wo + 1
    L = Hpo * Wpo            # flattened padded-phase spatial extent
    L_out = Ho * Wpo         # conv output in padded layout (one junk col per row)

    # Pad Cin to a sublane multiple so every in-kernel phase slice is aligned.
    cinp = ((Cin + 7) // 8) * 8

    # Cout tile: BN stats are per channel, so the split is embarrassingly parallel.
    TC = 128 if Cout % 128 == 0 else Cout
    c_tiles = Cout // TC

    if gamma is None:
        gamma = jnp.ones((Cout,), jnp.float32)
    if beta is None:
        beta = jnp.zeros((Cout,), jnp.float32)

    # ---- input prep: pad + split into the 4 stride-2 phases (phase-major rows),
    # flatten spatially, and add one trailing column so every shift-group slice fits.
    xp = jnp.pad(x, ((0, 0), (0, 0), (1, 1), (1, 1)))
    phases = jnp.stack(
        [xp[:, :, 1::2, 0::2],      # (row odd , col even)
         xp[:, :, 0::2, 0::2],      # (row even, col even)
         xp[:, :, 0::2, 1::2],      # (row even, col odd )
         xp[:, :, 1::2, 1::2]],     # (row odd , col odd )
        axis=1)                                              # (N, 4, Cin, Hpo, Wpo)
    if cinp != Cin:
        phases = jnp.pad(phases, ((0, 0), (0, 0), (0, cinp - Cin), (0, 0), (0, 0)))
    x_ph = phases.reshape(N, 4 * cinp, L)
    x_ph = jnp.pad(x_ph, ((0, 0), (0, 0), (0, 1))).astype(jnp.bfloat16)  # (N,4Cinp,L+1)

    # ---- conv weights regrouped by output shift, matching the phase-major rows.
    def tapw(di, dj):
        blk = weight[:, :, di, dj]                           # (Cout, Cin)
        if cinp != Cin:
            blk = jnp.pad(blk, ((0, 0), (0, cinp - Cin)))
        return blk

    bf16 = jnp.bfloat16
    w00 = jnp.concatenate([tapw(1, 0), tapw(0, 0), tapw(0, 1), tapw(1, 1)],
                          axis=1).astype(bf16)               # (Cout, 4*Cinp), shift 0
    w01 = jnp.concatenate([tapw(1, 2), tapw(0, 2)], axis=1).astype(bf16)   # shift 1
    w10 = jnp.concatenate([tapw(2, 0), tapw(2, 1)], axis=1).astype(bf16)   # shift Wpo
    w11 = tapw(2, 2).astype(bf16)                                          # shift Wpo+1

    # Valid-output mask for the padded spatial layout (drops one column per row).
    mask = ((jnp.arange(L_out) % Wpo) < Wo).astype(jnp.float32).reshape(1, L_out)

    # Explicit scoped-VMEM limit from the actual working set (double-buffered I/O
    # + f32 accumulator), capped below v7x's 64 MiB physical VMEM.
    xb = 4 * cinp * (L + 1) * 2
    wb = 9 * TC * cinp * 2
    yb = TC * L_out * 2
    accb = TC * L_out * 4
    need = 2 * (xb + wb + yb + L_out * 4) + accb + (4 << 20)
    vmem_limit = int(min(48 << 20, max(16 << 20, need)))

    # ---- pass 1: conv (bf16 MXU, f32 acc) + per-(sample, channel) sum / sumsq.
    conv_kernel = functools.partial(_conv_stats_kernel, cinp=cinp, wpo=Wpo,
                                    l_out=L_out)
    flops1 = 2 * N * Cout * 9 * cinp * L_out
    bytes1 = N * c_tiles * (xb + wb) + N * Cout * (L_out * 2 + 8)
    y, sums, sumsq = pl.pallas_call(
        conv_kernel,
        out_shape=(
            jax.ShapeDtypeStruct((N, Cout, L_out), jnp.bfloat16),
            jax.ShapeDtypeStruct((N, Cout, 1), jnp.float32),
            jax.ShapeDtypeStruct((N, Cout, 1), jnp.float32),
        ),
        grid=(N, c_tiles),
        in_specs=[
            pl.BlockSpec((1, 4 * cinp, L + 1), lambda n, c: (n, 0, 0)),
            pl.BlockSpec((TC, 4 * cinp), lambda n, c: (c, 0)),
            pl.BlockSpec((TC, 2 * cinp), lambda n, c: (c, 0)),
            pl.BlockSpec((TC, 2 * cinp), lambda n, c: (c, 0)),
            pl.BlockSpec((TC, cinp), lambda n, c: (c, 0)),
            pl.BlockSpec((1, L_out), lambda n, c: (0, 0)),
        ],
        out_specs=(
            pl.BlockSpec((1, TC, L_out), lambda n, c: (n, c, 0)),
            pl.BlockSpec((1, TC, 1), lambda n, c: (n, c, 0)),
            pl.BlockSpec((1, TC, 1), lambda n, c: (n, c, 0)),
        ),
        compiler_params=pltpu.CompilerParams(
            dimension_semantics=("parallel", "parallel"),
            vmem_limit_bytes=vmem_limit),
        cost_estimate=pl.CostEstimate(
            flops=flops1, transcendentals=0, bytes_accessed=bytes1),
    )(x_ph, w00, w01, w10, w11, mask)

    # ---- finalize batch statistics (tiny, Cout-sized) and fold gamma/beta.
    cnt = N * Ho * Wo
    s_tot = jnp.sum(sums, axis=0)                  # (Cout, 1)
    ss_tot = jnp.sum(sumsq, axis=0)                # (Cout, 1)
    mean = s_tot / cnt
    var = jnp.maximum(ss_tot / cnt - mean * mean, 0.0)
    inv_std = jax.lax.rsqrt(var + EPS)             # (Cout, 1)
    scale = gamma.astype(jnp.float32).reshape(Cout, 1) * inv_std
    shift = beta.astype(jnp.float32).reshape(Cout, 1) - mean * scale

    # ---- pass 2: normalize + LeakyReLU (elementwise, lane-dense (TC, L_out) blocks).
    bn_kernel = functools.partial(_bn_lrelu_kernel, neg_slope=NEG_SLOPE)
    bytes2 = N * Cout * L_out * (2 + 4) + 2 * Cout * 4
    out_flat = pl.pallas_call(
        bn_kernel,
        out_shape=jax.ShapeDtypeStruct((N, Cout, L_out), jnp.float32),
        grid=(N, c_tiles),
        in_specs=[
            pl.BlockSpec((1, TC, L_out), lambda n, c: (n, c, 0)),
            pl.BlockSpec((TC, 1), lambda n, c: (c, 0)),
            pl.BlockSpec((TC, 1), lambda n, c: (c, 0)),
        ],
        out_specs=pl.BlockSpec((1, TC, L_out), lambda n, c: (n, c, 0)),
        compiler_params=pltpu.CompilerParams(
            dimension_semantics=("parallel", "parallel"),
            vmem_limit_bytes=vmem_limit),
        cost_estimate=pl.CostEstimate(
            flops=3 * N * Cout * L_out, transcendentals=0, bytes_accessed=bytes2),
    )(y, scale, shift)

    # Padded spatial layout -> NCHW: cheap reshape + slice (drops the junk column).
    return out_flat.reshape(N, Cout, Ho, Wpo)[:, :, :, :Wo]


def _reference(x, weight, gamma, beta):
    """Pure-JAX f32 reference: conv + training-mode BatchNorm + LeakyReLU."""
    y = jax.lax.conv_general_dilated(
        x, weight, window_strides=(2, 2), padding=((1, 1), (1, 1)),
        dimension_numbers=("NCHW", "OIHW", "NCHW"),
        precision=jax.lax.Precision.HIGHEST)
    mean = jnp.mean(y, axis=(0, 2, 3), keepdims=True)
    var = jnp.mean((y - mean) ** 2, axis=(0, 2, 3), keepdims=True)
    yn = (y - mean) * jax.lax.rsqrt(var + EPS)
    yn = yn * gamma.reshape(1, -1, 1, 1) + beta.reshape(1, -1, 1, 1)
    return jnp.where(yn >= 0, yn, NEG_SLOPE * yn)


if __name__ == "__main__":
    key = jax.random.PRNGKey(0)
    kx, kw = jax.random.split(key)

    N, Cin, H, W = 2, 4, 16, 16
    Cout = 8

    x = jax.random.normal(kx, (N, Cin, H, W), dtype=jnp.float32)
    weight = 0.1 * jax.random.normal(kw, (Cout, Cin, 3, 3), dtype=jnp.float32)
    gamma = jnp.ones((Cout,), jnp.float32)
    beta = jnp.zeros((Cout,), jnp.float32)

    out = jax.block_until_ready(unet_down_bic(x, weight, gamma, beta))

    ref = _reference(x, weight, gamma, beta)
    assert out.shape == (N, Cout, H // 2, W // 2), out.shape
    max_err = float(jnp.max(jnp.abs(out - ref)))
    # bf16 MXU inputs + bf16 intermediate => bf16-appropriate tolerance vs f32 reference.
    assert jnp.allclose(out, ref, atol=2e-2, rtol=2e-2), max_err

    print("KERNEL_OK")
</pallas_src>

<mosaic_0001>
module attributes {stable_mosaic.version = 11 : i64} {
  func.func @_conv_stats_kernel(%arg0: i32, %arg1: i32, %arg2: memref<1x32x82xbf16, #tpu.memory_space<vmem>>, %arg3: memref<8x32xbf16, #tpu.memory_space<vmem>>, %arg4: memref<8x16xbf16, #tpu.memory_space<vmem>>, %arg5: memref<8x16xbf16, #tpu.memory_space<vmem>>, %arg6: memref<8x8xbf16, #tpu.memory_space<vmem>>, %arg7: memref<1x72xf32, #tpu.memory_space<vmem>>, %arg8: memref<1x8x72xbf16, #tpu.memory_space<vmem>>, %arg9: memref<1x8x1xf32, #tpu.memory_space<vmem>>, %arg10: memref<1x8x1xf32, #tpu.memory_space<vmem>>) attributes {dimension_semantics = [#tpu.dimension_semantics<parallel>, #tpu.dimension_semantics<parallel>], iteration_bounds = array<i64: 2, 1>, scalar_prefetch = 0 : i64, scratch_operands = 0 : i64, tpu.core_type = #tpu.core_type<tc>, window_params = [{transform_indices = @transform_0, window_bounds = array<i64: 1, 32, 82>}, {transform_indices = @transform_1, window_bounds = array<i64: 8, 32>}, {transform_indices = @transform_2, window_bounds = array<i64: 8, 16>}, {transform_indices = @transform_3, window_bounds = array<i64: 8, 16>}, {transform_indices = @transform_4, window_bounds = array<i64: 8, 8>}, {pipeline_mode = #tpu.pipeline_mode<synchronous>, transform_indices = @transform_5, window_bounds = array<i64: 1, 72>}, {transform_indices = @transform_6, window_bounds = array<i64: 1, 8, 72>}, {transform_indices = @transform_7, window_bounds = array<i64: 1, 8, 1>}, {transform_indices = @transform_8, window_bounds = array<i64: 1, 8, 1>}]} {
    %c0 = arith.constant 0 : index
    %c0_0 = arith.constant 0 : index
    %0 = vector.load %arg3[%c0, %c0_0] : memref<8x32xbf16, #tpu.memory_space<vmem>>, vector<8x32xbf16>
    %c0_1 = arith.constant 0 : index
    %c0_2 = arith.constant 0 : index
    %c0_3 = arith.constant 0 : index
    %1 = vector.load %arg2[%c0_1, %c0_2, %c0_3] : memref<1x32x82xbf16, #tpu.memory_space<vmem>>, vector<1x32x72xbf16>
    %2 = vector.shape_cast %1 : vector<1x32x72xbf16> to vector<32x72xbf16>
    %cst = arith.constant dense<0.000000e+00> : vector<8x72xf32>
    %3 = tpu.matmul %0, %2, %cst {dimension_numbers = #tpu.dot_dimension_numbers<[1], [0], [0], [1], [0, 0, 1, 1], [], []>} : vector<8x32xbf16>, vector<32x72xbf16>, vector<8x72xf32> -> vector<8x72xf32>
    %c0_4 = arith.constant 0 : index
    %c0_5 = arith.constant 0 : index
    %4 = vector.load %arg4[%c0_4, %c0_5] : memref<8x16xbf16, #tpu.memory_space<vmem>>, vector<8x16xbf16>
    %c0_6 = arith.constant 0 : index
    %c0_7 = arith.constant 0 : index
    %c1 = arith.constant 1 : index
    %5 = vector.load %arg2[%c0_6, %c0_7, %c1] : memref<1x32x82xbf16, #tpu.memory_space<vmem>>, vector<1x16x72xbf16>
    %6 = vector.shape_cast %5 : vector<1x16x72xbf16> to vector<16x72xbf16>
    %cst_8 = arith.constant dense<0.000000e+00> : vector<8x72xf32>
    %7 = tpu.matmul %4, %6, %cst_8 {dimension_numbers = #tpu.dot_dimension_numbers<[1], [0], [0], [1], [0, 0, 1, 1], [], []>} : vector<8x16xbf16>, vector<16x72xbf16>, vector<8x72xf32> -> vector<8x72xf32>
    %8 = arith.addf %3, %7 : vector<8x72xf32>
    %c0_9 = arith.constant 0 : index
    %c0_10 = arith.constant 0 : index
    %9 = vector.load %arg5[%c0_9, %c0_10] : memref<8x16xbf16, #tpu.memory_space<vmem>>, vector<8x16xbf16>
    %c0_11 = arith.constant 0 : index
    %c8 = arith.constant 8 : index
    %c9 = arith.constant 9 : index
    %10 = vector.load %arg2[%c0_11, %c8, %c9] : memref<1x32x82xbf16, #tpu.memory_space<vmem>>, vector<1x16x72xbf16>
    %11 = vector.shape_cast %10 : vector<1x16x72xbf16> to vector<16x72xbf16>
    %cst_12 = arith.constant dense<0.000000e+00> : vector<8x72xf32>
    %12 = tpu.matmul %9, %11, %cst_12 {dimension_numbers = #tpu.dot_dimension_numbers<[1], [0], [0], [1], [0, 0, 1, 1], [], []>} : vector<8x16xbf16>, vector<16x72xbf16>, vector<8x72xf32> -> vector<8x72xf32>
    %13 = arith.addf %8, %12 : vector<8x72xf32>
    %c0_13 = arith.constant 0 : index
    %c0_14 = arith.constant 0 : index
    %14 = vector.load %arg6[%c0_13, %c0_14] : memref<8x8xbf16, #tpu.memory_space<vmem>>, vector<8x8xbf16>
    %c0_15 = arith.constant 0 : index
    %c8_16 = arith.constant 8 : index
    %c10 = arith.constant 10 : index
    %15 = vector.load %arg2[%c0_15, %c8_16, %c10] : memref<1x32x82xbf16, #tpu.memory_space<vmem>>, vector<1x8x72xbf16>
    %16 = vector.shape_cast %15 : vector<1x8x72xbf16> to vector<8x72xbf16>
    %cst_17 = arith.constant dense<0.000000e+00> : vector<8x72xf32>
    %17 = tpu.matmul %14, %16, %cst_17 {dimension_numbers = #tpu.dot_dimension_numbers<[1], [0], [0], [1], [0, 0, 1, 1], [], []>} : vector<8x8xbf16>, vector<8x72xbf16>, vector<8x72xf32> -> vector<8x72xf32>
    %18 = arith.addf %13, %17 : vector<8x72xf32>
    %c0_18 = arith.constant 0 : index
    %c0_19 = arith.constant 0 : index
    %19 = vector.load %arg7[%c0_18, %c0_19] : memref<1x72xf32, #tpu.memory_space<vmem>>, vector<1x72xf32>
    %20 = vector.broadcast %19 : vector<1x72xf32> to vector<8x72xf32>
    %21 = arith.mulf %18, %20 : vector<8x72xf32>
    %22 = arith.truncf %21 : vector<8x72xf32> to vector<8x72xbf16>
    %c0_20 = arith.constant 0 : index
    %c0_21 = arith.constant 0 : index
    %c0_22 = arith.constant 0 : index
    %23 = vector.load %arg8[%c0_20, %c0_21, %c0_22] : memref<1x8x72xbf16, #tpu.memory_space<vmem>>, vector<1x8x72xbf16>
    %24 = vector.shape_cast %23 : vector<1x8x72xbf16> to vector<8x72xbf16>
    %25 = vector.shape_cast %22 : vector<8x72xbf16> to vector<1x8x72xbf16>
    tpu.vector_store %arg8[%c0_20, %c0_21, %c0_22], %25 {strides = array<i32>} : memref<1x8x72xbf16, #tpu.memory_space<vmem>>, vector<1x8x72xbf16>,
    %cst_23 = arith.constant dense<0.000000e+00> : vector<8xf32>
    %26 = vector.multi_reduction <add>, %21, %cst_23 [1] : vector<8x72xf32> to vector<8xf32>
    %27 = vector.shape_cast %26 : vector<8xf32> to vector<8x1xf32>
    %c0_24 = arith.constant 0 : index
    %c0_25 = arith.constant 0 : index
    %c0_26 = arith.constant 0 : index
    %28 = vector.load %arg9[%c0_24, %c0_25, %c0_26] : memref<1x8x1xf32, #tpu.memory_space<vmem>>, vector<1x8x1xf32>
    %29 = vector.shape_cast %28 : vector<1x8x1xf32> to vector<8x1xf32>
    %30 = vector.shape_cast %27 : vector<8x1xf32> to vector<1x8x1xf32>
    tpu.vector_store %arg9[%c0_24, %c0_25, %c0_26], %30 {strides = array<i32>} : memref<1x8x1xf32, #tpu.memory_space<vmem>>, vector<1x8x1xf32>,
    %31 = arith.mulf %21, %21 : vector<8x72xf32>
    %cst_27 = arith.constant dense<0.000000e+00> : vector<8xf32>
    %32 = vector.multi_reduction <add>, %31, %cst_27 [1] : vector<8x72xf32> to vector<8xf32>
    %33 = vector.shape_cast %32 : vector<8xf32> to vector<8x1xf32>
    %c0_28 = arith.constant 0 : index
    %c0_29 = arith.constant 0 : index
    %c0_30 = arith.constant 0 : index
    %34 = vector.load %arg10[%c0_28, %c0_29, %c0_30] : memref<1x8x1xf32, #tpu.memory_space<vmem>>, vector<1x8x1xf32>
    %35 = vector.shape_cast %34 : vector<1x8x1xf32> to vector<8x1xf32>
    %36 = vector.shape_cast %33 : vector<8x1xf32> to vector<1x8x1xf32>
    tpu.vector_store %arg10[%c0_28, %c0_29, %c0_30], %36 {strides = array<i32>} : memref<1x8x1xf32, #tpu.memory_space<vmem>>, vector<1x8x1xf32>,
    return
  }
  func.func @transform_0(%arg0: i32, %arg1: i32) -> (i32, i32, i32) {
    %c0_i32 = arith.constant 0 : i32
    %c0_i32_0 = arith.constant 0 : i32
    %c0_i32_1 = arith.constant 0 : i32
    return %arg0, %c0_i32, %c0_i32_0 : i32, i32, i32
  }
  func.func @transform_1(%arg0: i32, %arg1: i32) -> (i32, i32) {
    %c0_i32 = arith.constant 0 : i32
    %c0_i32_0 = arith.constant 0 : i32
    return %arg1, %c0_i32 : i32, i32
  }
  func.func @transform_2(%arg0: i32, %arg1: i32) -> (i32, i32) {
    %c0_i32 = arith.constant 0 : i32
    %c0_i32_0 = arith.constant 0 : i32
    return %arg1, %c0_i32 : i32, i32
  }
  func.func @transform_3(%arg0: i32, %arg1: i32) -> (i32, i32) {
    %c0_i32 = arith.constant 0 : i32
    %c0_i32_0 = arith.constant 0 : i32
    return %arg1, %c0_i32 : i32, i32
  }
  func.func @transform_4(%arg0: i32, %arg1: i32) -> (i32, i32) {
    %c0_i32 = arith.constant 0 : i32
    %c0_i32_0 = arith.constant 0 : i32
    return %arg1, %c0_i32 : i32, i32
  }
  func.func @transform_5(%arg0: i32, %arg1: i32) -> (i32, i32) {
    %c0_i32 = arith.constant 0 : i32
    %c0_i32_0 = arith.constant 0 : i32
    %c0_i32_1 = arith.constant 0 : i32
    return %c0_i32, %c0_i32_0 : i32, i32
  }
  func.func @transform_6(%arg0: i32, %arg1: i32) -> (i32, i32, i32) {
    %c0_i32 = arith.constant 0 : i32
    %c0_i32_0 = arith.constant 0 : i32
    return %arg0, %arg1, %c0_i32 : i32, i32, i32
  }
  func.func @transform_7(%arg0: i32, %arg1: i32) -> (i32, i32, i32) {
    %c0_i32 = arith.constant 0 : i32
    %c0_i32_0 = arith.constant 0 : i32
    return %arg0, %arg1, %c0_i32 : i32, i32, i32
  }
  func.func @transform_8(%arg0: i32, %arg1: i32) -> (i32, i32, i32) {
    %c0_i32 = arith.constant 0 : i32
    %c0_i32_0 = arith.constant 0 : i32
    return %arg0, %arg1, %c0_i32 : i32, i32, i32
  }
}

</mosaic_0001>

<bundles_post_ra>
// kernel: tpu_custom_call.1
= control target key start
LH: loop header
LB: loop body
LE: loop exit
PB: predicated region body
PF: predicated region fallthrough
CT: control target
= control target key end

     0   :  { %14 = vsyncpa [#allocation3], 0  ;;  %s1523_s0 = inlined_call_operand.hbm [shape: bf16[2,32,82], index: 0, kind: input, shape index: {}]   ;;  %s1524_s1 = inlined_call_operand.hbm [shape: bf16[8,32], index: 1, kind: input, shape index: {}]   ;;  %s1525_s2 = inlined_call_operand.vmem [shape: bf16[8,16], index: 2, kind: input, shape index: {}]   ;;  %s1526_s3 = inlined_call_operand.vmem [shape: bf16[8,16], index: 3, kind: input, shape index: {}]   ;;  %s1527_s4 = inlined_call_operand.vmem [shape: bf16[8,8], index: 4, kind: input, shape index: {}]   ;;  %s1528_s5 = inlined_call_operand.vmem [shape: f32[1,72], index: 5, kind: input, shape index: {}]   ;;  %s1529_s6 = inlined_call_operand.hbm [shape: bf16[2,8,72], index: 6, kind: output, shape index: {0}]   ;;  %s1530_s7 = inlined_call_operand.vmem [shape: f32[2,8,1], index: 7, kind: output, shape index: {1}]   ;;  %s1531_s8 = inlined_call_operand.vmem [shape: f32[2,8,1], index: 8, kind: output, shape index: {2}]  }
   0x1   :  { %16 = vsyncpa [#allocation3 + $0x1], 0 }
   0x2   :  { %17 = vsyncpa [#allocation6], 0 }
   0x3   :  { %18 = vsyncpa [#allocation4], 0 }
   0x4   :  { %20 = vsyncpa [#allocation4 + $0x1], 0  ;;  %s1279_s27 = smov 0   ;;  %s1281_s28 = smov 0  }
   0x5   :  { %s1283_s29 = smov 0   ;;  %s1285_s30 = smov 0  }
   0x6   :  { %s1287_s9 = smov 0   ;;  %s1289_s10 = smov 0  }
   0x7 LB: > { %1542 = sst [smem:[#allocation11_spill]] %s1202_s27  ;;  %s919_s11 = sadd.s32 4294967295, %s1222_s10   ;;  %s1222_s10 = sphi %s1289_s10, %s26_s10   ;;  %s1218_s9 = sphi %s1287_s9, %s1570_s9   ;;  %s1214_s30 = sphi %s1285_s30, %s1569_s30   ;;  %s1210_s29 = sphi %s1283_s29, %s1568_s29   ;;  %s1206_s28 = sphi %s1281_s28, %s1567_s28   ;;  %s1202_s27 = sphi %s1279_s27, %s1566_s27  }
   0x8   : > { %1543 = sst [smem:[#allocation12_spill]] %s1222_s10  ;;  %s920_s12 = sadd.s32 4294967294, %s1222_s10  }
   0x9   : > { %p52_p0 = scmp.ne.s32.totalorder %s1210_s29, %s1206_s28  ;;  %p53_p1 = scmp.eq.s32.totalorder %s1222_s10, 0 }
   0xa   : > { %p58_p2 = scmp.ne.s32.totalorder %s1206_s28, %s1202_s27  ;;  %p1317_p3 = scmp.eq.s32.totalorder %s919_s11, 0 }
   0xb   : > { %p209_p4 = scmp.eq.s32.totalorder %s919_s11, 1  ;;  %p1321_p5 = por %p53_p1, %p52_p0 }
   0xc   : > { %s1544_s14 = scalar_select %p1317_p3, 1, 0 }
   0xd   : > { %p215_p6 = scmp.eq.s32.totalorder %s920_s12, 1  ;;  %p1327_p7 = por %p1317_p3, %p58_p2 }
   0xe   : > { %p1331_p8 = por %p209_p4, %p52_p0  ;;  %p921_p10 = scmp.ge.s32.totalorder %s1222_s10, 1 }
   0xf   : > { %s1546_s16 = scalar_select %p1327_p7, 1, 0 }
  0x10   : > { %s1547_s17 = scalar_select %p1331_p8, 1, 0 }
  0x11   : > { %p1335_p9 = por %p215_p6, %p58_p2  ;;  %p278_p11 = scmp.lt.s32.totalorder %s1222_s10, 3 }
  0x12   : > { %s1224_s20 = smov [#allocation5]   ;;  %p1015_p1 = scmp.lt.s32.totalorder %s1222_s10, 2 }
  0x13   : > { %s1548_s18 = scalar_select %p1335_p9, 1, 0 }
  0x14   : > { %p1342_p13 = pnand %p921_p10, %p278_p11  ;;  %s293_s21 = sshll.u32 %s1224_s20, 4  ;;  %s294_s21 = int_to_ptr.vmem [resolvable:$true] %s293_s21 }
  0x15   : > { %1549 = sst [smem:[#allocation13_spill]] %s1548_s18  ;;  %p1351_p4 = pnand %p1015_p1, %p1321_p5 }
  0x16   : > { %s1550_s19 = scalar_select %p1342_p13, 1, 0 }
  0x17   : > { %p1002_p0 = pneg %p1342_p13  ;;  %s38_s24 = sadd.s32 1, %s1218_s9 }
  0x18   : > { %s1551_s22 = scalar_select %p1351_p4, 1, 0 }
  0x19   : > { %p1357_p2 = pnand %p1002_p0, %p1317_p3  ;;  %p1362_p6 = scmp.ge.s32.totalorder %s38_s24, 2 }
  0x1a   : > { %s328_s26 = sand.u32 1, %s1210_s29   ;;  %s1078_s15 = scalar_lea.hbm %s1524_s1, 64 }
  0x1b   : > { %s1553_s25 = scalar_select %p1362_p6, 1, 0 }
  0x1c   : > { %p1079_p5 = scmp.ne.s32.totalorder %s1524_s1, %s1078_s15  ;;  %p1080_p10 = pneg %p1357_p2 }
  0x1d   : > { %p1085_p0 = scmp.lt.u32.totalorder %s1078_s15, %s1524_s1 }
  0x1e   : > { %p1081_p11 = pnand %p1080_p10, %p1079_p5 }
  0x20   : > { %p1082_p1 = pneg %p1081_p11 }
  0x22   : > { %p1087_p12 = pnand %p1085_p0, %p1082_p1 }
  0x24   : > { %1090 = shalt.err (!%p1087_p12)
}
  0x25   : > { %s1091_s27 = scalar_lea.vmem %s294_s21, 64  ;;  %p1099_p7 = scmp.lt.s32.totalorder %s294_s21, %s294_s21 }
  0x26   : > { %p1092_p9 = scmp.ne.s32.totalorder %s294_s21, %s1091_s27  ;;  %p1100_p13 = scmp.lt.s32.totalorder %s1091_s27, %s1091_s27 }
  0x28   : > { %p1094_p8 = pnand %p1092_p9, %p1080_p10  ;;  %p1101_p4 = por %p1100_p13, %p1099_p7 }
  0x2a   : > { %p1095_p3 = pneg %p1094_p8 }
  0x2c   : > { %p1102_p6 = pnand %p1101_p4, %p1095_p3 }
  0x2e   : > { %1105 = shalt.err (!%p1102_p6)
}
  0x2f   : > { %1005 = dma.hbm_to_vmem [thread:$0]  (!%p1357_p2), %s1524_s1, 64, %s294_s21, [#allocation6]  }
  0x30   : > { %p1554_p9 = scmp.ne.s32.totalorder %s1553_s25, 0  ;;  %s927_s27 = sshll.u32 %s328_s26, 4 }
  0x31   : > { %s949_s18 = sshll.u32 %s1218_s9, 8  ;;  %s332_s20 = scalar_lea.vmem [#allocation2], %s927_s27 }
  0x32   : > { %s1572_s24 = smov (%p1554_p9, %s38_s24), 0  ;;  %s1393_s15 = scalar_lea.hbm %s1523_s0, %s949_s18 }
  0x33   : > { %s42_s10 = ssub.s32 %s1218_s9, %s1572_s24  ;;  %s339_s13 = sshll.u32 %s332_s20, 4  ;;  %s1400_s13 = int_to_ptr.vmem [resolvable:$true] %s339_s13 }
  0x34   : > { %p43_p3 = scmp.eq.s32.totalorder %s42_s10, 0  ;;  %s1555_s21 = sadd.s32 1, %s1210_s29 }
  0x35   : > { %s1402_s11 = scalar_lea.sflag [#allocation3], %s328_s26  ;;  %s1106_s10 = scalar_lea.hbm %s1393_s15, 256 }
  0x36   : > { %s1398_s25 = scalar_select %p43_p3, %s1210_s29, %s1555_s21  }
  0x37   : > { %p1107_p7 = scmp.ne.s32.totalorder %s1393_s15, %s1106_s10  ;;  %p1556_p8 = scmp.ne.s32.totalorder %s1551_s22, 0 }
  0x38   : > { %s1111_s27 = scalar_lea.hbm %s1523_s0, 512  ;;  %p1112_p2 = scmp.lt.u32.totalorder %s1393_s15, %s1523_s0 }
  0x39   : > { %p1108_p12 = pneg %p1556_p8  ;;  %p1113_p6 = scmp.lt.u32.totalorder %s1111_s27, %s1106_s10 }
  0x3a   : > { %p1115_p10 = scmp.lt.u32.totalorder %s1106_s10, %s1393_s15 }
  0x3b   : > { %p1109_p13 = pnand %p1108_p12, %p1107_p7  ;;  %p1114_p5 = por %p1113_p6, %p1112_p2 }
  0x3d   : > { %p1110_p4 = pneg %p1109_p13  ;;  %p1116_p11 = por %p1115_p10, %p1114_p5 }
  0x3f   : > { %p1117_p1 = pnand %p1116_p11, %p1110_p4 }
  0x41   : > { %1120 = shalt.err (!%p1117_p1)
}
  0x42   : > { %s1121_s26 = scalar_lea.vmem %s1400_s13, 256  ;;  %s1225_s21 = smov [#allocation2]  }
  0x43   : > { %p1122_p0 = scmp.ne.s32.totalorder %s1400_s13, %s1121_s26  ;;  %s1126_s18 = sshll.u32 %s1225_s21, 4  ;;  %s1127_s18 = int_to_ptr.vmem [resolvable:$false] %s1126_s18 }
  0x44   : > { %s1128_s23 = scalar_lea.vmem %s1127_s18, 512  ;;  %p1129_p7 = scmp.lt.s32.totalorder %s1400_s13, %s1127_s18 }
  0x45   : > { %p1124_p9 = pnand %p1122_p0, %p1108_p12  ;;  %p1130_p13 = scmp.lt.s32.totalorder %s1128_s23, %s1121_s26 }
  0x47   : > { %p1125_p3 = pneg %p1124_p9  ;;  %p1131_p2 = por %p1130_p13, %p1129_p7 }
  0x49   : > { %p1132_p6 = pnand %p1131_p2, %p1125_p3 }
  0x4b   : > { %1135 = shalt.err (!%p1132_p6)
}
  0x4c   : > { %s1226_s10 = smov 64   ;;  %s1227_s27 = smov 4  }
  0x4d   : > { %1009 = dma.hbm_to_vmem [thread:$0]  (!%p1556_p8), %s1393_s15, 256, %s1400_s13, %s1402_s11, %s1226_s10, %s1226_s10, %s1227_s27  }
  0x4e   : > { %p1557_p12 = scmp.ne.s32.totalorder %s1550_s19, 0 }
  0x4f   : > { %s1433_s12 = sand.u32 (!%p1557_p12), 1, %s1206_s28   ;;  %p1558_p4 = scmp.ne.s32.totalorder (!%p1557_p12), %s1546_s16, 0 }
  0x50   : > { %351 = sbr.rel (%p1557_p12) target bundleno = 591 (0x24f), region = 44  ;;  %s931_s20 = sshll.u32 (!%p1557_p12), %s1433_s12, 4 }
  0x51   : > { %s354_s26 = scalar_lea.sflag (!%p1557_p12), [#allocation3], %s1433_s12  ;;  %s1437_s21 = scalar_lea.vmem (!%p1557_p12), [#allocation2], %s931_s20 }
  0x57   : > { %1189 = dma.done.wait (%p1558_p4), %s354_s26, 256  }
  0x58   : > { %1191 = vsyncadd (%p1558_p4), %s354_s26, 4294967040  ;;  %p1559_p8 = scmp.ne.s32.totalorder %s1544_s14, 0 }
  0x5a   : > { %1193 = dma.done.wait (%p1559_p8), [#allocation6], 64  }
  0x5b   : > { %1195 = vsyncadd (%p1559_p8), [#allocation6], 4294967232  ;;  %v1228_v0 = vmov 0.0   ;;  %vm1229_vm0 = vmmov 0   ;;  %v448_v1 = vld [vmem:[%s1437_s21] sm:$0xf] }
  0x5c   : > { %959 = vmatprep.subr.bf16.mxu1 %v1228_v0  ;;  %961 = vmatprep.mubr.msk.bf16.mxu1 %vm1229_vm0, %v1228_v0  ;;  %v449_v2 = vld [vmem:[%s1437_s21 + $0x4] sm:$0xf]  ;;  %s1230_s16 = smov 127   ;;  %s1231_s14 = smov 118   ;;  %v452_v7 = vld [vmem:[%s1525_s2] sm:$0xf] }
  0x5d   : > { %973 = vmatprep.subr.bf16.mxu0 %v1228_v0  ;;  %975 = vmatprep.mubr.msk.bf16.mxu0 %vm1229_vm0, %v1228_v0  ;;  %v936_v3 = vcombine.low %v448_v1, %v449_v2  ;;  %v942_v4 = vcombine.low %v449_v2, %v449_v2  ;;  %v1075_v5 = vld [vmem:[%s1437_s21 + $0x4] sm:$0xff]   ;;  %s1232_s19 = smov 119   ;;  %vm461_vm1 = vcmask 130048   ;;  %vm619_vm2 = vcmask 1043456   ;;  %v556_v10 = vld [vmem:[%s1526_s3] sm:$0xf] }
  0x5e   : > { %v1077_v11 = vld [vmem:[%s1437_s21 + $0x8] sm:$0xff]   ;;  %v447_v13 = vld [vmem:[#allocation5] sm:$0xf]  ;;  %vm512_vm3 = vcmask 261120   ;;  %vm615_vm4 = vcmask 64512   ;;  %s933_s20 = sshll.u32 %s1433_s12, 2 }
  0x5f   : > { %458 = vrot.lane.b32.xlu0 %v936_v3, %s1230_s16  ;;  %613 = vrot.lane.b32.xlu1 %v942_v4, %s1231_s14  ;;  %v611_v14 = vld [vmem:[%s1527_s4] sm:$0xf]  ;;  %vm675_vm5 = vcmask 588800   ;;  %vm673_vm6 = vcmask 584704   ;;  %s401_s26 = scalar_lea.vmem [#allocation7], %s933_s20  ;;  %s946_s21 = sshll.u32 %s1214_s30, 6 }
  0x60   : > { %v944_v20 = vld [vmem:[%s1528_s5] ss:$0 sm:$0xff]  ;;  %s715_s22 = sshll.u32 %s401_s26, 4  ;;  %s687_s15 = scalar_lea.sflag [#allocation4], %s1433_s12  ;;  %s716_s22 = int_to_ptr.vmem [resolvable:$true] %s715_s22 }
  0x61   : > { %s1136_s13 = scalar_lea.vmem %s716_s22, 64  ;;  %p1560_p10 = scmp.ne.s32.totalorder %s1547_s17, 0 }
  0x62   : > { %p1137_p5 = scmp.ne.s32.totalorder %s716_s22, %s1136_s13  ;;  %s1233_s11 = smov [#allocation7]  }
  0x63   : > { %564 = vrot.lane.b32.xlu0 %v1075_v5, %s1232_s19  ;;  %s1472_s19 = scalar_lea.hbm %s1529_s6, %s946_s21  ;;  %s1140_s18 = sshll.u32 %s1233_s11, 4  ;;  %s1141_s18 = int_to_ptr.vmem [resolvable:$false] %s1140_s18 }
  0x64   : > { %p1138_p11 = pnand %p1137_p5, %p1560_p10  ;;  %s1142_s23 = scalar_lea.vmem %s1141_s18, 128 }
  0x65   : > { %p1143_p0 = scmp.lt.s32.totalorder %s716_s22, %s1141_s18  ;;  %p1144_p9 = scmp.lt.s32.totalorder %s1142_s23, %s1136_s13 }
  0x66   : > { %p1139_p1 = pneg %p1138_p11 }
  0x67   : > { %p1145_p3 = por %p1144_p9, %p1143_p0 }
  0x69   : > { %p1146_p7 = pnand %p1145_p3, %p1139_p1 }
  0xd1   : > { %v459_v6 = vpop.permute.xlu0 %458  ;;  %v614_v8 = vpop.permute.xlu1 %613 }
  0xd2   : > { %960 = vmatpush3.bf16.msra.mxu1 %v459_v6  ;;  %v621_v12 = vsel %vm619_vm2, %v614_v8, 0 }
  0xd3   : > { %965 = vmatprep.subr.bf16.mxu1 %v1228_v0 }
  0xd5   : > { %962 = vmatmul.mubr.msk.bf16.vlgmr.msra.gmra.mrb[0].mxu1 %vm461_vm1, %v452_v7  ;;  %v565_v9 = vpop.permute.xlu0 %564 }
  0xd6   : > { %974 = vmatpush3.bf16.msra.mxu0 %v565_v9  ;;  %966 = vmatpush3.bf16.msra.mxu1 %v936_v3 }
  0xd7   : > { %979 = vmatprep.subr.bf16.mxu0 %v1228_v0  ;;  %967 = vmatprep.subr.bf16.mxu1 %v1228_v0 }
  0xd8   : > { %969 = vmatprep.mubr.msk.bf16.mxu1 %vm1229_vm0, %v1228_v0 }
  0xd9   : > { %976 = vmatmul.mubr.msk.bf16.vlgmr.msra.gmra.mrb[0].mxu0 %vm461_vm1, %v556_v10 }
  0xda   : > { %980 = vmatpush3.bf16.msra.mxu0 %v621_v12  ;;  %968 = vmatpush3.bf16.msra.mxu1 %v1077_v11 }
  0xdb   : > { %981 = vmatprep.mubr.msk.bf16.mxu0 %vm1229_vm0, %v1228_v0 }
  0xe1   : > { %970 = vmatmul.mubr.msk.bf16.vlgmr.msra.gmra.mrb[0].mxu1 %vm512_vm3, %v447_v13 }
  0xe5   : > { %982 = vmatmul.mubr.msk.bf16.vlgmr.msra.gmra.mrb[0].mxu0 %vm615_vm4, %v611_v14 }
 0x1b4   : > { %v550_v15 = vpop.f32.mrb[0].mxu1 }
 0x1b5   : > { %v971_v16 = vpop.f32.mrb[1].mxu1 }
 0x1b6   : > { %v553_v17 = vpop.f32.mrb[2].mxu1 }
 0x1b7   : > { %v972_v18 = vpop.f32.mrb[3].mxu1 }
 0x1b8   : > { %v657_v19 = vpop.f32.mrb[0].mxu0 }
 0x1b9   : > { %v985_v21 = vadd.f32 %v657_v19, %v550_v15  ;;  %v983_v22 = vpop.f32.mrb[1].mxu0 }
 0x1ba   : > { %v660_v23 = vpop.f32.mrb[2].mxu0 }
 0x1bb   : > { %v671_v24 = vmul.f32 %v985_v21, %v944_v20  ;;  %v984_v25 = vpop.f32.mrb[3].mxu0 }
 0x1bd   : > { %v672_v26 = vpack.c.bf16 %v671_v24, %v671_v24  ;;  %v676_v27 = vsel %vm675_vm5, %v671_v24, 0.0  ;;  %v681_v28 = vmul.f32 %v671_v24, %v671_v24 }
 0x1be   : > { %677 = vadd.xlane.f32.xlu1 %v676_v27 }
 0x1bf   : > { %v682_v29 = vsel %vm675_vm5, %v681_v28, 0.0  ;;  %674 = vst.msk [vmem:[%s401_s26] sm:$0xf] %vm673_vm6, %v672_v26 }
 0x1c0   : > { %683 = vadd.xlane.f32.xlu0 %v682_v29 }
 0x1c1   : > { %1149 = shalt.err (!%p1146_p7)
}
 0x1c2   : > { %s1150_s12 = scalar_lea.hbm %s1472_s19, 64  ;;  %s1154_s20 = scalar_lea.hbm %s1529_s6, 128 }
 0x1c3   : > { %p1151_p13 = scmp.ne.s32.totalorder %s1472_s19, %s1150_s12  ;;  %p1155_p12 = scmp.lt.u32.totalorder %s1472_s19, %s1529_s6 }
 0x1c4   : > { %p1156_p4 = scmp.lt.u32.totalorder %s1154_s20, %s1150_s12  ;;  %p1158_p5 = scmp.lt.u32.totalorder %s1150_s12, %s1472_s19 }
 0x1c5   : > { %p1152_p2 = pnand %p1151_p13, %p1560_p10 }
 0x1c6   : > { %p1157_p8 = por %p1156_p4, %p1155_p12 }
 0x1c7   : > { %p1153_p6 = pneg %p1152_p2 }
 0x1c8   : > { %p1159_p11 = por %p1158_p5, %p1157_p8 }
 0x1ca   : > { %p1160_p1 = pnand %p1159_p11, %p1153_p6 }
 0x1cc   : > { %1163 = shalt.err (!%p1160_p1)
}
 0x1cd   : > { %1000 = dma.vmem_to_hbm [thread:$0]  (%p1560_p10), %s716_s22, 64, %s1472_s19, %s687_s15   ;;  %vm679_vm7 = vcmask 7168  }
 0x1ce   : > { %p432_p0 = scmp.lt.s32.totalorder %s1214_s30, 1 }
 0x1d0   : > { %s1574_s30 = smov (!%p432_p0, %s1214_s30), 1 }
 0x1d1   : > { %s934_s16 = sshll.u32 %s1574_s30, 3 }
 0x1d2   : > { %s438_s11 = scalar_lea.vmem %s1530_s7, %s934_s16  ;;  %s445_s12 = scalar_lea.vmem %s1531_s8, %s934_s16 }
 0x24b   : > { %v678_v30 = vpop.xlane.xlu1 %677 }
 0x24c   : > { %680 = vst.msk [vmem:[%s438_s11] sm:$0xff] %vm679_vm7, %v678_v30 }
 0x24d   : > { %v684_v31 = vpop.xlane.xlu0 %683 }
 0x24e   : > { %685 = vst.msk [vmem:[%s445_s12] sm:$0xff] %vm679_vm7, %v684_v31 }
 0x24f PF: > { %s1561_s17 = sld [smem:[#allocation11_spill]]  ;;  %s1562_s10 = sld [smem:[#allocation13_spill]] }
 0x250   : > { %s1563_s19 = sld [smem:[#allocation12_spill]] }
 0x255   : > { %s733_s22 = sand.u32 1, %s1561_s17   ;;  %p1564_p10 = scmp.ne.s32.totalorder %s1562_s10, 0 }
 0x256   : > { %p1565_p9 = scmp.ge.s32.totalorder %s1563_s19, 2  ;;  %s734_s30 = scalar_lea.sflag [#allocation4], %s733_s22 }
 0x258   : > { %p1011_p3 = pnand %p1565_p9, %p1564_p10 }
 0x25a   : > { %1197 = dma.done.wait (!%p1011_p3), %s734_s30, 64  }
 0x25b   : > { %1199 = vsyncadd (!%p1011_p3), %s734_s30, 4294967232  ;;  %s26_s10 = sadd.s32 1, %s1563_s19   ;;  %s1566_s27 = smov %s1206_s28 }
 0x25c   : > { %p23_p7 = scmp.ge.s32.totalorder %s26_s10, 4   ;;  %s1567_s28 = smov %s1210_s29 }
 0x25d   : > { %s1568_s29 = smov %s1398_s25  ;;  %s1569_s30 = smov %s1218_s9 }
 0x25e   : > { %s1570_s9 = smov %s1572_s24  ;;  %25 = sbr.rel (!%p23_p7) target bundleno = 7 (0x7), region = 127 }
 0x265   :  { %759 = vsyncpa [#allocation3], 1 }
 0x266   :  { %761 = vsyncpa [#allocation3 + $0x1], 1 }
 0x267   :  { %762 = vsyncpa [#allocation6], 1 }
 0x268   :  { %763 = vsyncpa [#allocation4], 1 }
 0x269   :  { %765 = vsyncpa [#allocation4 + $0x1], 1 }

</bundles_post_ra>
